<compile_context>
chip_gen: v6e
topology: v6e:2x2x1
jax: 0.10.0
libtpu: 0.0.40
codegen_flags: <defaults>
</compile_context>

<pallas_src>
import functools

import jax
import jax.numpy as jnp
from jax import lax
from jax.experimental import pallas as pl
from jax.experimental.pallas import tpu as pltpu


def _dummy_funcs_row_kernel(src_ref, w1a_ref, b1a_ref, wt2_ref, bt2_ref,
                            tvt_ref, w2bd_ref, b2c_ref, exp_ref, sum_ref,
                            out_ref, *, seq_len):
    M, D = src_ref.shape                      # M = Bt * L (batch folded)
    Bt = M // seq_len
    NH = w2bd_ref.shape[0]                    # N * H
    N = tvt_ref.shape[1]

    x = src_ref[...]                          # [M, D] f32

    # ---- fused first layer: all N func W1's + type-inference W1, one GEMM ----
    h = jnp.dot(x, w1a_ref[...], preferred_element_type=jnp.float32) \
        + b1a_ref[...]
    h = jnp.maximum(h, 0.0)                   # [M, N*H + H]
    h_ff = h[:, :NH]                          # [M, N*H] (lane-aligned slice)
    h_ti = h[:, NH:]                          # [M, H]
    # (dropout after the first-layer ReLU: identity in eval mode)

    # ---- type-inference second layer + double F.normalize (eps=1e-12) ----
    ti = jnp.dot(h_ti, wt2_ref[...], preferred_element_type=jnp.float32) \
        + bt2_ref[...]                        # [M, D]
    inv = lax.rsqrt(jnp.maximum(jnp.sum(ti * ti, axis=-1, keepdims=True),
                                1e-24))
    ti = ti * inv
    inv = lax.rsqrt(jnp.maximum(jnp.sum(ti * ti, axis=-1, keepdims=True),
                                1e-24))
    ti = ti * inv

    # ---- all N scores in one GEMM; per-batch softmax over L, no divide ----
    scores = jnp.dot(ti, tvt_ref[...],
                     preferred_element_type=jnp.float32)       # [M, N]
    s3 = scores.reshape(Bt, seq_len, N)
    m = jnp.max(s3, axis=1, keepdims=True)                     # over src_len
    e = jnp.exp(s3 - m)
    denom = jnp.sum(e, axis=1, keepdims=True)
    thr = 1.0 / seq_len + 1e-6
    # p > thr  <=>  e > thr * sum(e): drop the divide entirely.
    keep = (e > thr * denom).astype(jnp.float32).reshape(M, N)

    # ---- expand keep [M,N] -> [M,N*D] with a tiny MXU op (no lane slices) ----
    keep_exp = jnp.dot(keep, exp_ref[...],
                       preferred_element_type=jnp.float32)     # [M, N*D]

    # ---- block-diagonal second layer for all funcs in one GEMM ----
    o_all = jnp.maximum(
        jnp.dot(h_ff, w2bd_ref[...], preferred_element_type=jnp.float32)
        + b2c_ref[...], 0.0)                                   # [M, N*D]

    # ---- masked sum over funcs via a tiled-identity matmul ----
    summed = jnp.dot(o_all * keep_exp, sum_ref[...],
                     preferred_element_type=jnp.float32)       # [M, D]

    out_ref[...] = (N + 1.0) * x + summed


def prepare_params(wt1, bt1, wt2, bt2, type_vecs, w1, b1, w2, b2):
    """One-time (init-time) weight rearrangement; keep out of the forward."""
    N, D, H = w1.shape
    # Fused first-layer slab: [W1_cat (D, N*H) | Wt1 (D, H)] — big block first
    # so its slice is 128-lane aligned (N*H is a multiple of 128).
    w1_cat = jnp.transpose(w1, (1, 0, 2)).reshape(D, N * H)
    w1a = jnp.concatenate([w1_cat, wt1], axis=1)               # [D, N*H + H]
    b1a = jnp.concatenate([b1.reshape(1, N * H), bt1.reshape(1, H)], axis=1)
    tvt = jnp.transpose(type_vecs, (1, 0))                     # [D, N]
    # Block-diagonal second-layer weights: [N*H, N*D]
    w2bd = jnp.einsum('ij,ihd->ihjd', jnp.eye(N, dtype=w2.dtype),
                      w2).reshape(N * H, N * D)
    b2c = b2.reshape(1, N * D)
    # keep-expansion indicator [N, N*D] and func-sum tiled identity [N*D, D]
    expand = jnp.repeat(jnp.eye(N, dtype=jnp.float32), D, axis=1)
    summat = jnp.tile(jnp.eye(D, dtype=jnp.float32), (N, 1))
    return (w1a, b1a, wt2, bt2.reshape(1, D), tvt, w2bd, b2c, expand, summat)


@functools.partial(jax.jit, static_argnames=("batch_tile",))
def dummy_funcs_row(src, params, batch_tile=None):
    """src: [B, L, D]; params: output of prepare_params()."""
    B, L, D = src.shape
    w1a, b1a, wt2, bt2, tvt, w2bd, b2c, expand, summat = params
    N = tvt.shape[1]
    H = wt2.shape[0]

    Bt = B if batch_tile is None else batch_tile   # v7x: batch_tile = B // 2
    assert B % Bt == 0

    src2 = src.reshape(B * L, D)                   # free view in HBM
    const2d = lambda b: (0, 0)

    out2 = pl.pallas_call(
        functools.partial(_dummy_funcs_row_kernel, seq_len=L),
        out_shape=jax.ShapeDtypeStruct((B * L, D), jnp.float32),
        grid_spec=pltpu.PrefetchScalarGridSpec(
            num_scalar_prefetch=0,
            grid=(B // Bt,),
            in_specs=[
                pl.BlockSpec((Bt * L, D), lambda b: (b, 0)),     # folded src
                pl.BlockSpec((D, N * H + H), const2d),           # fused W1 slab
                pl.BlockSpec((1, N * H + H), const2d),           # fused b1
                pl.BlockSpec((H, D), const2d),                   # TI W2
                pl.BlockSpec((1, D), const2d),                   # TI b2
                pl.BlockSpec((D, N), const2d),                   # type_vecs.T
                pl.BlockSpec((N * H, N * D), const2d),           # blockdiag W2
                pl.BlockSpec((1, N * D), const2d),               # concat b2
                pl.BlockSpec((N, N * D), const2d),               # keep expander
                pl.BlockSpec((N * D, D), const2d),               # func-sum mat
            ],
            out_specs=pl.BlockSpec((Bt * L, D), lambda b: (b, 0)),
        ),
        compiler_params=pltpu.CompilerParams(
            dimension_semantics=("parallel",)),      # shards steps across TCs
    )(src2, w1a, b1a, wt2, bt2, tvt, w2bd, b2c, expand, summat)

    return out2.reshape(B, L, D)


def _reference(src, wt1, bt1, wt2, bt2, type_vecs, w1, b1, w2, b2):
    """Pure-JAX reference mirroring the PyTorch module (eval mode)."""
    B, L, D = src.shape
    N = w1.shape[0]

    def normalize(x):
        return x / jnp.maximum(
            jnp.sqrt(jnp.sum(x * x, axis=-1, keepdims=True)), 1e-12)

    ti = jnp.einsum('bld,dh->blh', src, wt1) + bt1[0]
    ti = jnp.maximum(ti, 0.0)
    ti = jnp.einsum('blh,hd->bld', ti, wt2) + bt2[0]
    src_types = normalize(ti)

    temp = src
    for i in range(N):
        n = normalize(src_types)
        scores = jnp.einsum('bld,d->bl', n, type_vecs[i])
        p = jax.nn.softmax(scores, axis=1)
        keep = (p > (1.0 / L + 1e-6)).astype(src.dtype)
        h = jnp.maximum(jnp.einsum('bld,dh->blh', src, w1[i]) + b1[i], 0.0)
        o = jnp.maximum(jnp.einsum('blh,hd->bld', h, w2[i]) + b2[i], 0.0)
        o = o * keep[:, :, None]
        temp = temp + (src + o)
    return temp


if __name__ == "__main__":
    B, L, D, H, N = 2, 8, 32, 64, 8

    key = jax.random.PRNGKey(0)
    keys = jax.random.split(key, 12)

    src = jax.random.normal(keys[0], (B, L, D), dtype=jnp.float32)

    # type_inference: Linear(D,H) -> ReLU -> Linear(H,D); weights stored (in,out)
    wt1 = jax.random.normal(keys[1], (D, H), jnp.float32) / jnp.sqrt(D)
    bt1 = (jax.random.normal(keys[2], (H,), jnp.float32) * 0.1).reshape(1, H)
    wt2 = jax.random.normal(keys[3], (H, D), jnp.float32) / jnp.sqrt(H)
    bt2 = (jax.random.normal(keys[4], (D,), jnp.float32) * 0.1).reshape(1, D)

    # per-func params, stacked along leading N
    w1 = jax.random.normal(keys[5], (N, D, H), jnp.float32) / jnp.sqrt(D)
    b1 = jax.random.normal(keys[6], (N, H), jnp.float32) * 0.1
    w2 = jax.random.normal(keys[7], (N, H, D), jnp.float32) / jnp.sqrt(H)
    b2 = jax.random.normal(keys[8], (N, D), jnp.float32) * 0.1

    tv = jax.random.normal(keys[9], (N, D), jnp.float32)
    type_vecs = tv / jnp.maximum(
        jnp.sqrt(jnp.sum(tv * tv, axis=-1, keepdims=True)), 1e-12)

    # One-time weight rearrangement (model-init-time work).
    params = prepare_params(wt1, bt1, wt2, bt2, type_vecs, w1, b1, w2, b2)
    params = jax.tree_util.tree_map(jax.block_until_ready, params)

    out = dummy_funcs_row(src, params)
    out = jax.block_until_ready(out)

    ref = _reference(src, wt1, bt1, wt2, bt2, type_vecs, w1, b1, w2, b2)
    assert out.shape == (B, L, D)
    assert bool(jnp.all(jnp.isfinite(out)))
    assert bool(jnp.allclose(out, ref, rtol=1e-3, atol=1e-3)), (
        float(jnp.max(jnp.abs(out - ref))))

    print("KERNEL_OK")
</pallas_src>

<mosaic_0001>
module attributes {stable_mosaic.version = 11 : i64} {
  func.func @_dummy_funcs_row_kernel(%arg0: i32, %arg1: memref<16x32xf32, #tpu.memory_space<vmem>>, %arg2: memref<32x576xf32, #tpu.memory_space<vmem>>, %arg3: memref<1x576xf32, #tpu.memory_space<vmem>>, %arg4: memref<64x32xf32, #tpu.memory_space<vmem>>, %arg5: memref<1x32xf32, #tpu.memory_space<vmem>>, %arg6: memref<32x8xf32, #tpu.memory_space<vmem>>, %arg7: memref<512x256xf32, #tpu.memory_space<vmem>>, %arg8: memref<1x256xf32, #tpu.memory_space<vmem>>, %arg9: memref<8x256xf32, #tpu.memory_space<vmem>>, %arg10: memref<256x32xf32, #tpu.memory_space<vmem>>, %arg11: memref<16x32xf32, #tpu.memory_space<vmem>>) attributes {dimension_semantics = [#tpu.dimension_semantics<parallel>], iteration_bounds = array<i64: 1>, scalar_prefetch = 0 : i64, scratch_operands = 0 : i64, tpu.core_type = #tpu.core_type<tc>, window_params = [{transform_indices = @transform_0, window_bounds = array<i64: 16, 32>}, {pipeline_mode = #tpu.pipeline_mode<synchronous>, transform_indices = @transform_1, window_bounds = array<i64: 32, 576>}, {pipeline_mode = #tpu.pipeline_mode<synchronous>, transform_indices = @transform_2, window_bounds = array<i64: 1, 576>}, {pipeline_mode = #tpu.pipeline_mode<synchronous>, transform_indices = @transform_3, window_bounds = array<i64: 64, 32>}, {pipeline_mode = #tpu.pipeline_mode<synchronous>, transform_indices = @transform_4, window_bounds = array<i64: 1, 32>}, {pipeline_mode = #tpu.pipeline_mode<synchronous>, transform_indices = @transform_5, window_bounds = array<i64: 32, 8>}, {pipeline_mode = #tpu.pipeline_mode<synchronous>, transform_indices = @transform_6, window_bounds = array<i64: 512, 256>}, {pipeline_mode = #tpu.pipeline_mode<synchronous>, transform_indices = @transform_7, window_bounds = array<i64: 1, 256>}, {pipeline_mode = #tpu.pipeline_mode<synchronous>, transform_indices = @transform_8, window_bounds = array<i64: 8, 256>}, {pipeline_mode = #tpu.pipeline_mode<synchronous>, transform_indices = @transform_9, window_bounds = array<i64: 256, 32>}, {transform_indices = @transform_10, window_bounds = array<i64: 16, 32>}]} {
    %c0 = arith.constant 0 : index
    %c0_0 = arith.constant 0 : index
    %0 = vector.load %arg1[%c0, %c0_0] : memref<16x32xf32, #tpu.memory_space<vmem>>, vector<16x32xf32>
    %c0_1 = arith.constant 0 : index
    %c0_2 = arith.constant 0 : index
    %1 = vector.load %arg2[%c0_1, %c0_2] : memref<32x576xf32, #tpu.memory_space<vmem>>, vector<32x576xf32>
    %cst = arith.constant dense<0.000000e+00> : vector<16x576xf32>
    %2 = tpu.matmul %0, %1, %cst {dimension_numbers = #tpu.dot_dimension_numbers<[1], [0], [0], [1], [0, 0, 1, 1], [], []>} : vector<16x32xf32>, vector<32x576xf32>, vector<16x576xf32> -> vector<16x576xf32>
    %c0_3 = arith.constant 0 : index
    %c0_4 = arith.constant 0 : index
    %3 = vector.load %arg3[%c0_3, %c0_4] : memref<1x576xf32, #tpu.memory_space<vmem>>, vector<1x576xf32>
    %4 = vector.broadcast %3 : vector<1x576xf32> to vector<16x576xf32>
    %5 = arith.addf %2, %4 : vector<16x576xf32>
    %cst_5 = arith.constant 0.000000e+00 : f32
    %6 = vector.broadcast %cst_5 : f32 to vector<16x576xf32>
    %7 = arith.maximumf %5, %6 : vector<16x576xf32>
    %8 = vector.extract_strided_slice %7 {offsets = [0, 0], sizes = [16, 512], strides = [1, 1]} : vector<16x576xf32> to vector<16x512xf32>
    %9 = vector.extract_strided_slice %7 {offsets = [0, 512], sizes = [16, 64], strides = [1, 1]} : vector<16x576xf32> to vector<16x64xf32>
    %c0_6 = arith.constant 0 : index
    %c0_7 = arith.constant 0 : index
    %10 = vector.load %arg4[%c0_6, %c0_7] : memref<64x32xf32, #tpu.memory_space<vmem>>, vector<64x32xf32>
    %cst_8 = arith.constant dense<0.000000e+00> : vector<16x32xf32>
    %11 = tpu.matmul %9, %10, %cst_8 {dimension_numbers = #tpu.dot_dimension_numbers<[1], [0], [0], [1], [0, 0, 1, 1], [], []>} : vector<16x64xf32>, vector<64x32xf32>, vector<16x32xf32> -> vector<16x32xf32>
    %c0_9 = arith.constant 0 : index
    %c0_10 = arith.constant 0 : index
    %12 = vector.load %arg5[%c0_9, %c0_10] : memref<1x32xf32, #tpu.memory_space<vmem>>, vector<1x32xf32>
    %13 = vector.broadcast %12 : vector<1x32xf32> to vector<16x32xf32>
    %14 = arith.addf %11, %13 : vector<16x32xf32>
    %15 = arith.mulf %14, %14 : vector<16x32xf32>
    %cst_11 = arith.constant dense<0.000000e+00> : vector<16xf32>
    %16 = vector.multi_reduction <add>, %15, %cst_11 [1] : vector<16x32xf32> to vector<16xf32>
    %17 = vector.shape_cast %16 : vector<16xf32> to vector<16x1xf32>
    %cst_12 = arith.constant 1.000000e-24 : f32
    %18 = vector.broadcast %cst_12 : f32 to vector<16x1xf32>
    %19 = arith.maximumf %17, %18 : vector<16x1xf32>
    %20 = math.rsqrt %19 : vector<16x1xf32>
    %21 = vector.broadcast %20 : vector<16x1xf32> to vector<16x32xf32>
    %22 = arith.mulf %14, %21 : vector<16x32xf32>
    %23 = arith.mulf %22, %22 : vector<16x32xf32>
    %cst_13 = arith.constant dense<0.000000e+00> : vector<16xf32>
    %24 = vector.multi_reduction <add>, %23, %cst_13 [1] : vector<16x32xf32> to vector<16xf32>
    %25 = vector.shape_cast %24 : vector<16xf32> to vector<16x1xf32>
    %cst_14 = arith.constant 1.000000e-24 : f32
    %26 = vector.broadcast %cst_14 : f32 to vector<16x1xf32>
    %27 = arith.maximumf %25, %26 : vector<16x1xf32>
    %28 = math.rsqrt %27 : vector<16x1xf32>
    %29 = vector.broadcast %28 : vector<16x1xf32> to vector<16x32xf32>
    %30 = arith.mulf %22, %29 : vector<16x32xf32>
    %c0_15 = arith.constant 0 : index
    %c0_16 = arith.constant 0 : index
    %31 = vector.load %arg6[%c0_15, %c0_16] : memref<32x8xf32, #tpu.memory_space<vmem>>, vector<32x8xf32>
    %cst_17 = arith.constant dense<0.000000e+00> : vector<16x8xf32>
    %32 = tpu.matmul %30, %31, %cst_17 {dimension_numbers = #tpu.dot_dimension_numbers<[1], [0], [0], [1], [0, 0, 1, 1], [], []>} : vector<16x32xf32>, vector<32x8xf32>, vector<16x8xf32> -> vector<16x8xf32>
    %33 = vector.shape_cast %32 : vector<16x8xf32> to vector<2x8x8xf32>
    %cst_18 = arith.constant dense<0xFF800000> : vector<2x8xf32>
    %34 = vector.multi_reduction <maximumf>, %33, %cst_18 [1] : vector<2x8x8xf32> to vector<2x8xf32>
    %35 = vector.shape_cast %34 : vector<2x8xf32> to vector<2x1x8xf32>
    %36 = vector.broadcast %35 : vector<2x1x8xf32> to vector<2x8x8xf32>
    %37 = arith.subf %33, %36 : vector<2x8x8xf32>
    %38 = math.exp %37 : vector<2x8x8xf32>
    %cst_19 = arith.constant dense<0.000000e+00> : vector<2x8xf32>
    %39 = vector.multi_reduction <add>, %38, %cst_19 [1] : vector<2x8x8xf32> to vector<2x8xf32>
    %40 = vector.shape_cast %39 : vector<2x8xf32> to vector<2x1x8xf32>
    %cst_20 = arith.constant 1.250010e-01 : f32
    %41 = vector.broadcast %cst_20 : f32 to vector<2x1x8xf32>
    %42 = arith.mulf %41, %40 : vector<2x1x8xf32>
    %43 = vector.broadcast %42 : vector<2x1x8xf32> to vector<2x8x8xf32>
    %44 = arith.cmpf ogt, %38, %43 : vector<2x8x8xf32>
    %45 = arith.extui %44 : vector<2x8x8xi1> to vector<2x8x8xi32>
    %46 = arith.sitofp %45 : vector<2x8x8xi32> to vector<2x8x8xf32>
    %47 = vector.shape_cast %46 : vector<2x8x8xf32> to vector<16x8xf32>
    %c0_21 = arith.constant 0 : index
    %c0_22 = arith.constant 0 : index
    %48 = vector.load %arg9[%c0_21, %c0_22] : memref<8x256xf32, #tpu.memory_space<vmem>>, vector<8x256xf32>
    %cst_23 = arith.constant dense<0.000000e+00> : vector<16x256xf32>
    %49 = tpu.matmul %47, %48, %cst_23 {dimension_numbers = #tpu.dot_dimension_numbers<[1], [0], [0], [1], [0, 0, 1, 1], [], []>} : vector<16x8xf32>, vector<8x256xf32>, vector<16x256xf32> -> vector<16x256xf32>
    %c0_24 = arith.constant 0 : index
    %c0_25 = arith.constant 0 : index
    %50 = vector.load %arg7[%c0_24, %c0_25] : memref<512x256xf32, #tpu.memory_space<vmem>>, vector<512x256xf32>
    %cst_26 = arith.constant dense<0.000000e+00> : vector<16x256xf32>
    %51 = tpu.matmul %8, %50, %cst_26 {dimension_numbers = #tpu.dot_dimension_numbers<[1], [0], [0], [1], [0, 0, 1, 1], [], []>} : vector<16x512xf32>, vector<512x256xf32>, vector<16x256xf32> -> vector<16x256xf32>
    %c0_27 = arith.constant 0 : index
    %c0_28 = arith.constant 0 : index
    %52 = vector.load %arg8[%c0_27, %c0_28] : memref<1x256xf32, #tpu.memory_space<vmem>>, vector<1x256xf32>
    %53 = vector.broadcast %52 : vector<1x256xf32> to vector<16x256xf32>
    %54 = arith.addf %51, %53 : vector<16x256xf32>
    %cst_29 = arith.constant 0.000000e+00 : f32
    %55 = vector.broadcast %cst_29 : f32 to vector<16x256xf32>
    %56 = arith.maximumf %54, %55 : vector<16x256xf32>
    %57 = arith.mulf %56, %49 : vector<16x256xf32>
    %c0_30 = arith.constant 0 : index
    %c0_31 = arith.constant 0 : index
    %58 = vector.load %arg10[%c0_30, %c0_31] : memref<256x32xf32, #tpu.memory_space<vmem>>, vector<256x32xf32>
    %cst_32 = arith.constant dense<0.000000e+00> : vector<16x32xf32>
    %59 = tpu.matmul %57, %58, %cst_32 {dimension_numbers = #tpu.dot_dimension_numbers<[1], [0], [0], [1], [0, 0, 1, 1], [], []>} : vector<16x256xf32>, vector<256x32xf32>, vector<16x32xf32> -> vector<16x32xf32>
    %cst_33 = arith.constant 9.000000e+00 : f32
    %60 = vector.broadcast %cst_33 : f32 to vector<16x32xf32>
    %61 = arith.mulf %60, %0 : vector<16x32xf32>
    %62 = arith.addf %61, %59 : vector<16x32xf32>
    %c0_34 = arith.constant 0 : index
    %c0_35 = arith.constant 0 : index
    %63 = vector.load %arg11[%c0_34, %c0_35] : memref<16x32xf32, #tpu.memory_space<vmem>>, vector<16x32xf32>
    tpu.vector_store %arg11[%c0_34, %c0_35], %62 {strides = array<i32>} : memref<16x32xf32, #tpu.memory_space<vmem>>, vector<16x32xf32>,
    return
  }
  func.func @transform_0(%arg0: i32) -> (i32, i32) {
    %c0_i32 = arith.constant 0 : i32
    %c0_i32_0 = arith.constant 0 : i32
    return %arg0, %c0_i32 : i32, i32
  }
  func.func @transform_1(%arg0: i32) -> (i32, i32) {
    %c0_i32 = arith.constant 0 : i32
    %c0_i32_0 = arith.constant 0 : i32
    %c0_i32_1 = arith.constant 0 : i32
    return %c0_i32, %c0_i32_0 : i32, i32
  }
  func.func @transform_2(%arg0: i32) -> (i32, i32) {
    %c0_i32 = arith.constant 0 : i32
    %c0_i32_0 = arith.constant 0 : i32
    %c0_i32_1 = arith.constant 0 : i32
    return %c0_i32, %c0_i32_0 : i32, i32
  }
  func.func @transform_3(%arg0: i32) -> (i32, i32) {
    %c0_i32 = arith.constant 0 : i32
    %c0_i32_0 = arith.constant 0 : i32
    %c0_i32_1 = arith.constant 0 : i32
    return %c0_i32, %c0_i32_0 : i32, i32
  }
  func.func @transform_4(%arg0: i32) -> (i32, i32) {
    %c0_i32 = arith.constant 0 : i32
    %c0_i32_0 = arith.constant 0 : i32
    %c0_i32_1 = arith.constant 0 : i32
    return %c0_i32, %c0_i32_0 : i32, i32
  }
  func.func @transform_5(%arg0: i32) -> (i32, i32) {
    %c0_i32 = arith.constant 0 : i32
    %c0_i32_0 = arith.constant 0 : i32
    %c0_i32_1 = arith.constant 0 : i32
    return %c0_i32, %c0_i32_0 : i32, i32
  }
  func.func @transform_6(%arg0: i32) -> (i32, i32) {
    %c0_i32 = arith.constant 0 : i32
    %c0_i32_0 = arith.constant 0 : i32
    %c0_i32_1 = arith.constant 0 : i32
    return %c0_i32, %c0_i32_0 : i32, i32
  }
  func.func @transform_7(%arg0: i32) -> (i32, i32) {
    %c0_i32 = arith.constant 0 : i32
    %c0_i32_0 = arith.constant 0 : i32
    %c0_i32_1 = arith.constant 0 : i32
    return %c0_i32, %c0_i32_0 : i32, i32
  }
  func.func @transform_8(%arg0: i32) -> (i32, i32) {
    %c0_i32 = arith.constant 0 : i32
    %c0_i32_0 = arith.constant 0 : i32
    %c0_i32_1 = arith.constant 0 : i32
    return %c0_i32, %c0_i32_0 : i32, i32
  }
  func.func @transform_9(%arg0: i32) -> (i32, i32) {
    %c0_i32 = arith.constant 0 : i32
    %c0_i32_0 = arith.constant 0 : i32
    %c0_i32_1 = arith.constant 0 : i32
    return %c0_i32, %c0_i32_0 : i32, i32
  }
  func.func @transform_10(%arg0: i32) -> (i32, i32) {
    %c0_i32 = arith.constant 0 : i32
    %c0_i32_0 = arith.constant 0 : i32
    return %arg0, %c0_i32 : i32, i32
  }
}

</mosaic_0001>

<bundles_post_ra>
// kernel: dummy_funcs_row.1
= control target key start
LH: loop header
LB: loop body
LE: loop exit
PB: predicated region body
PF: predicated region fallthrough
CT: control target
= control target key end

     0   :  { %15 = vsyncpa [#allocation3], 0  ;;  %s1640_s0 = inlined_call_operand.vmem [shape: f32[16,32], index: 0, kind: input, shape index: {}]   ;;  %s1641_s1 = inlined_call_operand.vmem [shape: f32[32,576], index: 1, kind: input, shape index: {}]   ;;  %s1642_s2 = inlined_call_operand.vmem [shape: f32[1,576], index: 2, kind: input, shape index: {}]   ;;  %s1643_s3 = inlined_call_operand.vmem [shape: f32[64,32], index: 3, kind: input, shape index: {}]   ;;  %s1644_s4 = inlined_call_operand.vmem [shape: f32[1,32], index: 4, kind: input, shape index: {}]   ;;  %s1645_s5 = inlined_call_operand.vmem [shape: f32[32,8], index: 5, kind: input, shape index: {}]   ;;  %s1646_s6 = inlined_call_operand.hbm [shape: f32[512,256], index: 6, kind: input, shape index: {}]   ;;  %s1647_s7 = inlined_call_operand.vmem [shape: f32[1,256], index: 7, kind: input, shape index: {}]   ;;  %s1648_s8 = inlined_call_operand.vmem [shape: f32[8,256], index: 8, kind: input, shape index: {}]   ;;  %s1649_s9 = inlined_call_operand.vmem [shape: f32[256,32], index: 9, kind: input, shape index: {}]   ;;  %s1650_s10 = inlined_call_operand.hbm [shape: f32[16,32], index: 10, kind: output, shape index: {}]  }
   0x1   :  { %16 = vsyncpa [#allocation4], 0  ;;  %s1296_s13 = smov [#allocation2]  }
   0x2   :  { %s34_s14 = sshll.u32 %s1296_s13, 4  ;;  %s35_s14 = int_to_ptr.vmem [resolvable:$true] %s34_s14 }
   0x3   :  { %s1260_s15 = scalar_lea.vmem %s35_s14, 16384  ;;  %p1265_p1 = scmp.lt.s32.totalorder %s35_s14, %s35_s14 }
   0x4   :  { %p1261_p0 = scmp.ne.s32.totalorder %s35_s14, %s1260_s15  ;;  %p1266_p2 = scmp.lt.s32.totalorder %s1260_s15, %s1260_s15 }
   0x6   :  { %p1267_p3 = por %p1266_p2, %p1265_p1 }
   0x8   :  { %p1268_p4 = pnand %p1267_p3, %p1261_p0 }
   0xa   :  { %1271 = shalt.err (!%p1268_p4)
}
   0xb   :  { %s1297_s16 = smov 256   ;;  %s1298_s17 = smov 16  }
   0xc   :  { %40 = dma.hbm_to_vmem [thread:$0]  %s1646_s6, 16384, %s35_s14, [#allocation3], %s1297_s16, %s1297_s16, %s1298_s17  }
   0xd   :  { %1292 = dma.done.wait [#allocation3], 16384  }
   0xe   :  { %1293 = vsyncadd [#allocation3], 4294950912  ;;  %v1299_v0 = vmov 0.0   ;;  %v68_v1 = vld [vmem:[%s1641_s1 + $0x80] sm:$0xff]  ;;  %v67_v2 = vld [vmem:[%s1641_s1 + $0x78] sm:$0xff]  ;;  %vm99_vm0 = vcmask 261120  }
   0xf   :  { %170 = vmatprep.mubr.f32.mxu0 %v1299_v0  ;;  %247 = vmatprep.mubr.f32.mxu1 %v1299_v0  ;;  %v63_v3 = vld [vmem:[%s1641_s1 + $0x58] sm:$0xff]  ;;  %v62_v4 = vld [vmem:[%s1641_s1 + $0x50] sm:$0xff]  ;;  %v57_v6 = vld [vmem:[%s1641_s1 + $0x28] sm:$0xff]  ;;  %vm360_vm1 = vcmask 523264   ;;  %vm555_vm2 = vcmask 64512  }
  0x10   :  { %130 = vmatprep.subr.mxu0 %v68_v1  ;;  %v58_v5 = vld [vmem:[%s1641_s1 + $0x30] sm:$0xff]  ;;  %v53_v7 = vld [vmem:[%s1641_s1 + $0x8] sm:$0xff]  ;;  %v52_v8 = vld [vmem:[%s1641_s1] sm:$0xff] }
  0x11   :  { %131 = vmatpush1.msra.mxu0 %v67_v2  ;;  %v70_v9 = vld [vmem:[%s1641_s1 + $0x90] sm:$0xff]  ;;  %v69_v10 = vld [vmem:[%s1641_s1 + $0x88] sm:$0xff]  ;;  %v64_v12 = vld [vmem:[%s1641_s1 + $0x60] sm:$0xff] }
  0x12   :  { %132 = vmatprep.subr.mxu0 %v63_v3  ;;  %207 = vmatprep.subr.mxu1 %v70_v9  ;;  %v65_v11 = vld [vmem:[%s1641_s1 + $0x68] sm:$0xff]  ;;  %v50_v13 = vld [vmem:[%s1640_s0] sm:$0xff]  ;;  %v71_v14 = vld [vmem:[%s1641_s1 + $0x98] sm:$0xff] }
  0x13   :  { %133 = vmatpush1.msra.mxu0 %v62_v4  ;;  %208 = vmatpush1.msra.mxu1 %v69_v10  ;;  %v66_v15 = vld [vmem:[%s1641_s1 + $0x70] sm:$0xff]  ;;  %v60_v16 = vld [vmem:[%s1641_s1 + $0x40] sm:$0xff]  ;;  %v59_v17 = vld [vmem:[%s1641_s1 + $0x38] sm:$0xff] }
  0x14   :  { %134 = vmatprep.subr.mxu0 %v58_v5  ;;  %209 = vmatprep.subr.mxu1 %v65_v11  ;;  %v51_v18 = vld [vmem:[%s1640_s0 + $0x8] sm:$0xff]  ;;  %v56_v20 = vld [vmem:[%s1641_s1 + $0x20] sm:$0xff]  ;;  %v55_v21 = vld [vmem:[%s1641_s1 + $0x18] sm:$0xff] }
  0x15   :  { %135 = vmatpush1.msra.mxu0 %v57_v6  ;;  %210 = vmatpush1.msra.mxu1 %v64_v12  ;;  %v61_v19 = vld [vmem:[%s1641_s1 + $0x48] sm:$0xff]  ;;  %v54_v22 = vld [vmem:[%s1641_s1 + $0x10] sm:$0xff]  ;;  %v714_v23 = vld [vmem:[#allocation2 + $0xf8] sm:$0xff] }
  0x16   :  { %136 = vmatprep.subr.mxu0 %v53_v7  ;;  %211 = vmatprep.subr.mxu1 %v60_v16  ;;  %v713_v24 = vld [vmem:[#allocation2 + $0xf0] sm:$0xff]  ;;  %v712_v25 = vld [vmem:[#allocation2 + $0xe8] sm:$0xff]  ;;  %v711_v26 = vld [vmem:[#allocation2 + $0xe0] sm:$0xff] }
  0x17   :  { %137 = vmatpush1.msra.mxu0 %v52_v8  ;;  %212 = vmatpush1.msra.mxu1 %v59_v17  ;;  %v710_v27 = vld [vmem:[#allocation2 + $0xd8] sm:$0xff]  ;;  %v709_v28 = vld [vmem:[#allocation2 + $0xd0] sm:$0xff]  ;;  %v708_v29 = vld [vmem:[#allocation2 + $0xc8] sm:$0xff] }
  0x18   :  { %1115 = vmatmul.mubr.msk.f32.vlgmr.msra.gmra.mxu0 %vm99_vm0, %v50_v13  ;;  %1190 = vmatprep.subr.mxu0 %v71_v14  ;;  %v707_v30 = vld [vmem:[#allocation2 + $0xc0] sm:$0xff]  ;;  %v706_v31 = vld [vmem:[#allocation2 + $0xb8] sm:$0xff]  ;;  %v705_v32 = vld [vmem:[#allocation2 + $0xb0] sm:$0xff] }
  0x19   :  { %1191 = vmatpush3.msra.mxu0 %v71_v14  ;;  %176 = vmatprep.mubr.f32.mxu0 %v1299_v0  ;;  %v704_v33 = vld [vmem:[#allocation2 + $0xa8] sm:$0xff]  ;;  %v703_v34 = vld [vmem:[#allocation2 + $0xa0] sm:$0xff]  ;;  %v702_v35 = vld [vmem:[#allocation2 + $0x98] sm:$0xff] }
  0x1a   :  { %1192 = vmatprep.subr.mxu0 %v66_v15  ;;  %213 = vmatprep.subr.mxu1 %v55_v21  ;;  %v701_v36 = vld [vmem:[#allocation2 + $0x90] sm:$0xff]  ;;  %v700_v37 = vld [vmem:[#allocation2 + $0x88] sm:$0xff]  ;;  %v699_v38 = vld [vmem:[#allocation2 + $0x80] sm:$0xff] }
  0x1b   :  { %1193 = vmatpush3.msra.mxu0 %v66_v15  ;;  %214 = vmatpush1.msra.mxu1 %v54_v22  ;;  %v698_v39 = vld [vmem:[#allocation2 + $0x78] sm:$0xff]  ;;  %v697_v40 = vld [vmem:[#allocation2 + $0x70] sm:$0xff]  ;;  %v696_v41 = vld [vmem:[#allocation2 + $0x68] sm:$0xff] }
  0x1c   :  { %1116 = vmatmul.mubr.msk.f32.gmra.mxu0 %vm99_vm0, %v51_v18  ;;  %1194 = vmatprep.subr.mxu0 %v61_v19  ;;  %v695_v42 = vld [vmem:[#allocation2 + $0x60] sm:$0xff]  ;;  %v694_v43 = vld [vmem:[#allocation2 + $0x58] sm:$0xff]  ;;  %v693_v44 = vld [vmem:[#allocation2 + $0x50] sm:$0xff] }
  0x1d   :  { %1195 = vmatpush3.msra.mxu0 %v61_v19  ;;  %1198 = vmatprep.mubr.msk.f32.mxu0 %vm99_vm0, %v50_v13  ;;  %v692_v45 = vld [vmem:[#allocation2 + $0x48] sm:$0xff]  ;;  %v691_v46 = vld [vmem:[#allocation2 + $0x40] sm:$0xff]  ;;  %v690_v47 = vld [vmem:[#allocation2 + $0x38] sm:$0xff] }
  0x1e   :  { %1196 = vmatprep.subr.mxu0 %v56_v20  ;;  %823 = vmatprep.subr.mxu1 %v714_v23  ;;  %v689_v48 = vld [vmem:[#allocation2 + $0x30] sm:$0xff]  ;;  %v688_v49 = vld [vmem:[#allocation2 + $0x28] sm:$0xff]  ;;  %v687_v50 = vld [vmem:[#allocation2 + $0x20] sm:$0xff] }
  0x1f   :  { %1197 = vmatpush3.msra.mxu0 %v56_v20  ;;  %1117 = vmatmul.mubr.msk.f32.vlgmr.msra.gmra.mxu1 %vm99_vm0, %v50_v13  ;;  %v686_v51 = vld [vmem:[#allocation2 + $0x18] sm:$0xff]  ;;  %v685_v52 = vld [vmem:[#allocation2 + $0x10] sm:$0xff]  ;;  %v684_v53 = vld [vmem:[#allocation2 + $0x8] sm:$0xff] }
  0x20   :  { %1199 = vmatmul.mubr.msk.f32.vlgmr.msra.gmra.mxu0 %vm99_vm0, %v51_v18  ;;  %824 = vmatpush1.msra.mxu1 %v713_v24  ;;  %v683_v54 = vld [vmem:[#allocation2] sm:$0xff]  ;;  %v746_v55 = vld [vmem:[#allocation2 + $0x1f8] sm:$0xff]  ;;  %v745_v56 = vld [vmem:[#allocation2 + $0x1f0] sm:$0xff] }
  0x21   :  { %253 = vmatprep.mubr.f32.mxu1 %v1299_v0  ;;  %825 = vmatprep.subr.mxu1 %v712_v25  ;;  %v744_v57 = vld [vmem:[#allocation2 + $0x1e8] sm:$0xff]  ;;  %v743_v58 = vld [vmem:[#allocation2 + $0x1e0] sm:$0xff]  ;;  %v742_v59 = vld [vmem:[#allocation2 + $0x1d8] sm:$0xff] }
  0x22   :  { %826 = vmatpush1.msra.mxu1 %v711_v26  ;;  %v741_v60 = vld [vmem:[#allocation2 + $0x1d0] sm:$0xff]  ;;  %v740_v61 = vld [vmem:[#allocation2 + $0x1c8] sm:$0xff]  ;;  %v739_v62 = vld [vmem:[#allocation2 + $0x1c0] sm:$0xff] }
  0x23   :  { %827 = vmatprep.subr.mxu1 %v710_v27  ;;  %1118 = vmatmul.mubr.msk.f32.gmra.mxu1 %vm99_vm0, %v51_v18  ;;  %v738_v63 = vld [vmem:[#allocation2 + $0x1b8] sm:$0xff]  ;;  %v737_v1 = vld [vmem:[#allocation2 + $0x1b0] sm:$0xff]  ;;  %v736_v2 = vld [vmem:[#allocation2 + $0x1a8] sm:$0xff] }
  0x24   :  { %828 = vmatpush1.msra.mxu1 %v709_v28  ;;  %v735_v3 = vld [vmem:[#allocation2 + $0x1a0] sm:$0xff]  ;;  %v734_v4 = vld [vmem:[#allocation2 + $0x198] sm:$0xff]  ;;  %v733_v5 = vld [vmem:[#allocation2 + $0x190] sm:$0xff] }
  0x25   :  { %829 = vmatprep.subr.mxu1 %v708_v29  ;;  %v732_v6 = vld [vmem:[#allocation2 + $0x188] sm:$0xff]  ;;  %v731_v7 = vld [vmem:[#allocation2 + $0x180] sm:$0xff]  ;;  %v730_v8 = vld [vmem:[#allocation2 + $0x178] sm:$0xff] }
  0x26   :  { %830 = vmatpush1.msra.mxu1 %v707_v30  ;;  %v729_v9 = vld [vmem:[#allocation2 + $0x170] sm:$0xff]  ;;  %v728_v10 = vld [vmem:[#allocation2 + $0x168] sm:$0xff]  ;;  %v727_v11 = vld [vmem:[#allocation2 + $0x160] sm:$0xff] }
  0x27   :  { %831 = vmatprep.subr.mxu1 %v706_v31  ;;  %v726_v12 = vld [vmem:[#allocation2 + $0x158] sm:$0xff]  ;;  %v725_v13 = vld [vmem:[#allocation2 + $0x150] sm:$0xff]  ;;  %v724_v14 = vld [vmem:[#allocation2 + $0x148] sm:$0xff] }
  0x28   :  { %832 = vmatpush1.msra.mxu1 %v705_v32  ;;  %v723_v15 = vld [vmem:[#allocation2 + $0x140] sm:$0xff]  ;;  %v352_v16 = vld [vmem:[%s1643_s3 + $0x38] sm:$0xff]  ;;  %v721_v18 = vld [vmem:[#allocation2 + $0x130] sm:$0xff]  ;;  %v74_v32 = vlaneseq }
  0x29   :  { %833 = vmatprep.subr.mxu1 %v704_v33  ;;  %v722_v17 = vld [vmem:[#allocation2 + $0x138] sm:$0xff]  ;;  %1201 = vmatprep.subr.mxu0 %v352_v16  ;;  %v351_v19 = vld [vmem:[%s1643_s3 + $0x30] sm:$0xff]  ;;  %v720_v20 = vld [vmem:[#allocation2 + $0x128] sm:$0xff] }
  0x2a   :  { %834 = vmatpush1.msra.mxu1 %v703_v34  ;;  %1202 = vmatpush3.msra.mxu0 %v352_v16  ;;  %v719_v21 = vld [vmem:[#allocation2 + $0x120] sm:$0xff]  ;;  %v350_v22 = vld [vmem:[%s1643_s3 + $0x28] sm:$0xff]  ;;  %v718_v23 = vld [vmem:[#allocation2 + $0x118] sm:$0xff]  ;;  %v1461_v33 = vshrl.u32 %v74_v32, 7 }
  0x2b   :  { %835 = vmatprep.subr.mxu1 %v702_v35  ;;  %1203 = vmatprep.subr.mxu0 %v351_v19  ;;  %v717_v24 = vld [vmem:[#allocation2 + $0x110] sm:$0xff]  ;;  %v349_v25 = vld [vmem:[%s1643_s3 + $0x20] sm:$0xff]  ;;  %v716_v26 = vld [vmem:[#allocation2 + $0x108] sm:$0xff] }
  0x2c   :  { %836 = vmatpush1.msra.mxu1 %v701_v36  ;;  %1204 = vmatpush3.msra.mxu0 %v351_v19  ;;  %v715_v27 = vld [vmem:[#allocation2 + $0x100] sm:$0xff]  ;;  %v348_v28 = vld [vmem:[%s1643_s3 + $0x18] sm:$0xff]  ;;  %v347_v29 = vld [vmem:[%s1643_s3 + $0x10] sm:$0xff]  ;;  %v76_v34 = vsub.s32 0, %v1461_v33  ;;  %v80_v36 = vsub.s32 1, %v1461_v33 }
  0x2d   :  { %837 = vmatprep.subr.mxu1 %v700_v37  ;;  %1205 = vmatprep.subr.mxu0 %v350_v22  ;;  %v346_v30 = vld [vmem:[%s1643_s3 + $0x8] sm:$0xff]  ;;  %v345_v31 = vld [vmem:[%s1643_s3] sm:$0xff]  ;;  %s1300_s3 = smov [#allocation5]  }
  0x2e   :  { %838 = vmatpush1.msra.mxu1 %v699_v38  ;;  %1206 = vmatpush3.msra.mxu0 %v350_v22  ;;  %v1467_v35 = vld [vmem:[%s1642_s2] sm:$0x1f]  ;;  %v471_v19 = vld [vmem:[%s1645_s5 + $0x8] sm:$0xff] }
  0x2f   :  { %839 = vmatprep.subr.mxu1 %v698_v39  ;;  %1207 = vmatprep.subr.mxu0 %v349_v25  ;;  %v77_v37 = vrot.slane %v1467_v35, %v76_v34  ;;  %v81_v38 = vrot.slane %v1467_v35, %v80_v36 }
  0x30   :  { %840 = vmatpush1.msra.mxu1 %v697_v40  ;;  %1208 = vmatpush3.msra.mxu0 %v349_v25 }
  0x31   :  { %841 = vmatprep.subr.mxu1 %v696_v41  ;;  %1209 = vmatprep.subr.mxu0 %v348_v28 }
  0x32   :  { %842 = vmatpush1.msra.mxu1 %v695_v42  ;;  %1210 = vmatpush3.msra.mxu0 %v348_v28  ;;  %v92_v42 = vsub.s32 4, %v1461_v33 }
  0x33   :  { %843 = vmatprep.subr.mxu1 %v694_v43  ;;  %1211 = vmatprep.subr.mxu0 %v347_v29 }
  0x34   :  { %844 = vmatpush1.msra.mxu1 %v693_v44  ;;  %1212 = vmatpush3.msra.mxu0 %v347_v29  ;;  %v599_v29 = vld [vmem:[%s1648_s8 + $0x8] sm:$0xff] }
  0x35   :  { %845 = vmatprep.subr.mxu1 %v692_v45  ;;  %1213 = vmatprep.subr.mxu0 %v346_v30 }
  0x36   :  { %846 = vmatpush1.msra.mxu1 %v691_v46  ;;  %1214 = vmatpush3.msra.mxu0 %v346_v30  ;;  %v598_v30 = vld [vmem:[%s1648_s8] sm:$0xff] }
  0x37   :  { %847 = vmatprep.subr.mxu1 %v690_v47  ;;  %1215 = vmatprep.subr.mxu0 %v345_v31 }
  0x38   :  { %848 = vmatpush1.msra.mxu1 %v689_v48  ;;  %1216 = vmatpush3.msra.mxu0 %v345_v31  ;;  %v778_v31 = vld [vmem:[#allocation2 + $0x2f8] sm:$0xff] }
  0x39   :  { %849 = vmatprep.subr.mxu1 %v688_v49  ;;  %v93_v49 = vrot.slane %v1467_v35, %v92_v42 }
  0x3a   :  { %850 = vmatpush1.msra.mxu1 %v687_v50 }
  0x3b   :  { %851 = vmatprep.subr.mxu1 %v686_v51 }
  0x3c   :  { %852 = vmatpush1.msra.mxu1 %v685_v52 }
  0x3d   :  { %853 = vmatprep.subr.mxu1 %v684_v53 }
  0x3e   :  { %854 = vmatpush1.msra.mxu1 %v683_v54 }
  0x3f   :  { %855 = vmatprep.subr.mxu1 %v746_v55 }
  0x40   :  { %856 = vmatpush2.msra.mxu1 %v745_v56 }
  0x41   :  { %857 = vmatprep.subr.mxu1 %v744_v57 }
  0x42   :  { %858 = vmatpush2.msra.mxu1 %v743_v58 }
  0x43   :  { %859 = vmatprep.subr.mxu1 %v742_v59 }
  0x44   :  { %860 = vmatpush2.msra.mxu1 %v741_v60  ;;  %v1121_v60 = vld [vmem:[%s1644_s4] ss:$0 sm:$0xff]  ;;  %s1103_s4 = sshll.u32 %s1300_s3, 4  ;;  %s1104_s4 = int_to_ptr.vmem [resolvable:$true] %s1103_s4 }
  0x45   :  { %861 = vmatprep.subr.mxu1 %v740_v61  ;;  %s1272_s18 = scalar_lea.vmem %s1104_s4, 256  ;;  %p1277_p6 = scmp.lt.s32.totalorder %s1104_s4, %s1104_s4 }
  0x46   :  { %862 = vmatpush2.msra.mxu1 %v739_v62  ;;  %p1273_p5 = scmp.ne.s32.totalorder %s1104_s4, %s1272_s18  ;;  %p1278_p7 = scmp.lt.s32.totalorder %s1272_s18, %s1272_s18 }
  0x47   :  { %863 = vmatprep.subr.mxu1 %v738_v63 }
  0x48   :  { %864 = vmatpush2.msra.mxu1 %v737_v1  ;;  %p1279_p8 = por %p1278_p7, %p1277_p6 }
  0x49   :  { %865 = vmatprep.subr.mxu1 %v736_v2 }
  0x4a   :  { %866 = vmatpush2.msra.mxu1 %v735_v3  ;;  %p1280_p9 = pnand %p1279_p8, %p1273_p5 }
  0x4b   :  { %867 = vmatprep.subr.mxu1 %v734_v4 }
  0x4c   :  { %868 = vmatpush2.msra.mxu1 %v733_v5 }
  0x4d   :  { %869 = vmatprep.subr.mxu1 %v732_v6 }
  0x4e   :  { %870 = vmatpush2.msra.mxu1 %v731_v7 }
  0x4f   :  { %871 = vmatprep.subr.mxu1 %v730_v8 }
  0x50   :  { %872 = vmatpush2.msra.mxu1 %v729_v9 }
  0x51   :  { %873 = vmatprep.subr.mxu1 %v728_v10 }
  0x52   :  { %874 = vmatpush2.msra.mxu1 %v727_v11 }
  0x53   :  { %875 = vmatprep.subr.mxu1 %v726_v12 }
  0x54   :  { %876 = vmatpush2.msra.mxu1 %v725_v13 }
  0x55   :  { %877 = vmatprep.subr.mxu1 %v724_v14 }
  0x56   :  { %878 = vmatpush2.msra.mxu1 %v723_v15 }
  0x57   :  { %879 = vmatprep.subr.mxu1 %v722_v17  ;;  %v473_v17 = vld [vmem:[%s1645_s5 + $0x18] sm:$0xff] }
  0x58   :  { %880 = vmatpush2.msra.mxu1 %v721_v18  ;;  %v472_v18 = vld [vmem:[%s1645_s5 + $0x10] sm:$0xff]  ;;  %1220 = vmatprep.subr.mxu0 %v473_v17 }
  0x59   :  { %881 = vmatprep.subr.mxu1 %v720_v20  ;;  %v470_v20 = vld [vmem:[%s1645_s5] sm:$0xff] }
  0x5a   :  { %882 = vmatpush2.msra.mxu1 %v719_v21 }
  0x5b   :  { %883 = vmatprep.subr.mxu1 %v718_v23 }
  0x5c   :  { %884 = vmatpush2.msra.mxu1 %v717_v24 }
  0x5d   :  { %885 = vmatprep.subr.mxu1 %v716_v26 }
  0x5e   :  { %886 = vmatpush2.msra.mxu1 %v715_v27 }
  0xd8   :  { %v172_v39 = vpop.f32.mrf.mxu0 }
  0xd9   :  { %v173_v40 = vadd.f32 %v172_v39, %v77_v37 }
  0xda   :  { %v174_v41 = vpop.f32.mrf.mxu0 }
  0xdb   :  { %v175_v43 = vadd.f32 %v174_v41, %v81_v38  ;;  %v335_v46 = vmax.f32 %v173_v40, 0.0 }
  0xdc   :  { %v178_v44 = vpop.f32.mrf.mxu0 }
  0xdd   :  { %v336_v45 = vmax.f32 %v175_v43, 0.0  ;;  %v179_v47 = vadd.f32 %v178_v44, %v77_v37 }
  0xde   :  { %v180_v48 = vpop.f32.mrf.mxu0 }
  0xdf   :  { %v181_v50 = vadd.f32 %v180_v48, %v81_v38  ;;  %887 = vmatprep.mubr.f32.mxu1 %v336_v45  ;;  %v340_v53 = vmax.f32 %v179_v47, 0.0 }
  0xe0   :  { %v1200_v51 = vpop.f32.mrf.mxu0  ;;  %888 = vmatmul.mubr.f32.vlgmr.msra.gmra.mxu1 %v335_v46 }
  0xe1   :  { %v341_v52 = vmax.f32 %v181_v50, 0.0  ;;  %v332_v54 = vadd.f32 %v1200_v51, %v93_v49 }
  0xe2   :  { %v326_v55 = vpop.f32.mrf.mxu0 }
  0xe3   :  { %v327_v56 = vadd.f32 %v326_v55, %v93_v49  ;;  %893 = vmatprep.mubr.f32.mxu1 %v341_v52  ;;  %v344_v58 = vmax.f32 %v332_v54, 0.0 }
  0xe4   :  { %894 = vmatmul.mubr.f32.gmra.mxu1 %v340_v53 }
  0xe5   :  { %v339_v57 = vmax.f32 %v327_v56, 0.0 }
  0xe7   :  { %1217 = vmatprep.mubr.msk.f32.mxu0 %vm360_vm1, %v339_v57 }
  0xe8   :  { %1218 = vmatmul.mubr.msk.f32.vlgmr.msra.gmra.mxu0 %vm360_vm1, %v344_v58 }
  0xe9   :  { %1221 = vmatpush3.msra.mxu0 %v473_v17 }
  0xea   :  { %1222 = vmatprep.subr.mxu0 %v472_v18 }
  0xeb   :  { %1223 = vmatpush3.msra.mxu0 %v472_v18  ;;  %v776_v18 = vld [vmem:[#allocation2 + $0x2e8] sm:$0xff] }
  0xec   :  { %1224 = vmatprep.subr.mxu0 %v471_v19 }
  0xed   :  { %1225 = vmatpush3.msra.mxu0 %v471_v19  ;;  %v775_v19 = vld [vmem:[#allocation2 + $0x2e0] sm:$0xff] }
  0xee   :  { %1226 = vmatprep.subr.mxu0 %v470_v20 }
  0xef   :  { %1227 = vmatpush3.msra.mxu0 %v470_v20 }
  0xf0   :  { %636 = vmatprep.subr.mxu0 %v599_v29  ;;  %v767_v29 = vld [vmem:[#allocation2 + $0x2a0] sm:$0xff] }
 0x1a8   :  { %v1219_v59 = vpop.f32.mrf.mxu0 }
 0x1a9   :  { %v439_v62 = vadd.f32 %v1219_v59, %v1121_v60 }
 0x1aa   :  { %v433_v61 = vpop.f32.mrf.mxu0 }
 0x1ab   :  { %v434_v63 = vadd.f32 %v1121_v60, %v433_v61  ;;  %v443_v3 = vmul.f32 %v439_v62, %v439_v62 }
 0x1ad   :  { %v442_v1 = vmul.f32 %v434_v63, %v434_v63  ;;  %v447_v4 = vsel %vm99_vm0, %v443_v3, 0.0 }
 0x1af   :  { %v444_v2 = vsel %vm99_vm0, %v442_v1, 0.0 }
 0x1b0   :  { %445 = vadd.xlane.f32.xlu0 %v444_v2 }
 0x1b4   :  { %448 = vadd.xlane.f32.xlu0 %v447_v4  ;;  %v88_v4 = vsub.s32 3, %v1461_v33 }
 0x239   :  { %v446_v5 = vpop.xlane.xlu0 %445 }
 0x23a   :  { %v450_v6 = vmax.f32 %v446_v5, 1e-24 }
 0x23c   :  { %1238 = vrsqrt.f32 %v450_v6 }
 0x23d   :  { %v449_v7 = vpop.xlane.xlu0 %448 }
 0x23e   :  { %v451_v8 = vmax.f32 %v449_v7, 1e-24  ;;  %v1511_v7 = vpop.f32.mrf.mxu1 }
 0x240   :  { %1240 = vrsqrt.f32 %v451_v8 }
 0x249   :  { %v1239_v9 = vpop.eup %1238 }
 0x24a   :  { %v454_v10 = vmul.f32 %v1239_v9, %v434_v63 }
 0x24c   :  { %v456_v11 = vmul.f32 %v454_v10, %v454_v10 }
 0x24d   :  { %v1241_v12 = vpop.eup %1240 }
 0x24e   :  { %v458_v13 = vsel %vm99_vm0, %v456_v11, 0.0  ;;  %v455_v14 = vmul.f32 %v1241_v12, %v439_v62  ;;  %v251_v12 = vpop.f32.mrf.mxu1 }
 0x24f   :  { %459 = vadd.xlane.f32.xlu1 %v458_v13 }
 0x250   :  { %v457_v15 = vmul.f32 %v455_v14, %v455_v14 }
 0x252   :  { %v461_v16 = vsel %vm99_vm0, %v457_v15, 0.0 }
 0x253   :  { %462 = vadd.xlane.f32.xlu1 %v461_v16  ;;  %v777_v16 = vld [vmem:[#allocation2 + $0x2f0] sm:$0xff] }
 0x2d8   :  { %v460_v21 = vpop.xlane.xlu1 %459 }
 0x2d9   :  { %v464_v22 = vmax.f32 %v460_v21, 1e-24  ;;  %v774_v21 = vld [vmem:[#allocation2 + $0x2d8] sm:$0xff] }
 0x2db   :  { %1242 = vrsqrt.f32 %v464_v22  ;;  %v773_v22 = vld [vmem:[#allocation2 + $0x2d0] sm:$0xff] }
 0x2dc   :  { %v463_v23 = vpop.xlane.xlu1 %462 }
 0x2dd   :  { %v465_v24 = vmax.f32 %v463_v23, 1e-24 }
 0x2df   :  { %1244 = vrsqrt.f32 %v465_v24  ;;  %v772_v24 = vld [vmem:[#allocation2 + $0x2c8] sm:$0xff] }
 0x2e8   :  { %v1243_v25 = vpop.eup %1242 }
 0x2e9   :  { %v468_v26 = vmul.f32 %v1243_v25, %v454_v10  ;;  %v1514_v10 = vrot.slane %v1467_v35, %v88_v4  ;;  %v771_v25 = vld [vmem:[#allocation2 + $0x2c0] sm:$0xff]  ;;  %v796_v4 = vld [vmem:[#allocation2 + $0x388] sm:$0xff] }
 0x2eb   :  { %1228 = vmatprep.mubr.msk.f32.mxu0 %vm99_vm0, %v468_v26  ;;  %v252_v15 = vadd.f32 %v251_v12, %v1514_v10  ;;  %v770_v26 = vld [vmem:[#allocation2 + $0x2b8] sm:$0xff] }
 0x2ec   :  { %v1245_v27 = vpop.eup %1244  ;;  %v790_v12 = vld [vmem:[#allocation2 + $0x358] sm:$0xff] }
 0x2ed   :  { %v469_v28 = vmul.f32 %v1245_v27, %v455_v14  ;;  %v338_v20 = vmax.f32 %v252_v15, 0.0  ;;  %v769_v27 = vld [vmem:[#allocation2 + $0x2b0] sm:$0xff]  ;;  %v788_v15 = vld [vmem:[#allocation2 + $0x348] sm:$0xff] }
 0x2ef   :  { %1229 = vmatmul.mubr.msk.f32.vlgmr.msra.gmra.mxu0 %vm99_vm0, %v469_v28  ;;  %v768_v28 = vld [vmem:[#allocation2 + $0x2a8] sm:$0xff] }
 0x2f0   :  { %670 = vmatprep.mubr.f32.mxu0 %v1299_v0  ;;  %637 = vmatpush1.msra.mxu0 %v598_v30  ;;  %v766_v30 = vld [vmem:[#allocation2 + $0x298] sm:$0xff] }
 0x2f1   :  { %900 = vmatprep.subr.mxu0 %v778_v31  ;;  %v765_v31 = vld [vmem:[#allocation2 + $0x290] sm:$0xff] }
 0x3af   :  { %v1230_v32 = vpop.f32.mrf.mxu0 }
 0x3b0   :  { %v563_v37 = vsel %vm555_vm2, %v1230_v32, -inf }
 0x3b1   :  { %v564_v38 = vrot.slane %v563_v37, 4  ;;  %v546_v39 = vpop.f32.mrf.mxu0 }
 0x3b2   :  { %v556_v40 = vsel %vm555_vm2, %v546_v39, -inf }
 0x3b3   :  { %v565_v41 = vmax.f32 %v563_v37, %v564_v38  ;;  %v557_v42 = vrot.slane %v556_v40, 4  ;;  %v762_v37 = vld [vmem:[#allocation2 + $0x278] sm:$0xff]  ;;  %v761_v38 = vld [vmem:[#allocation2 + $0x270] sm:$0xff] }
 0x3b5   :  { %v566_v43 = vrot.slane %v565_v41, 2  ;;  %v558_v44 = vmax.f32 %v556_v40, %v557_v42  ;;  %v759_v40 = vld [vmem:[#allocation2 + $0x260] sm:$0xff]  ;;  %v757_v42 = vld [vmem:[#allocation2 + $0x250] sm:$0xff] }
 0x3b7   :  { %v567_v45 = vmax.f32 %v565_v41, %v566_v43  ;;  %v559_v46 = vrot.slane %v558_v44, 2  ;;  %v758_v41 = vld [vmem:[#allocation2 + $0x258] sm:$0xff]  ;;  %v756_v43 = vld [vmem:[#allocation2 + $0x248] sm:$0xff] }
 0x3b9   :  { %v568_v47 = vrot.slane %v567_v45, 1  ;;  %v560_v48 = vmax.f32 %v558_v44, %v559_v46  ;;  %v755_v44 = vld [vmem:[#allocation2 + $0x240] sm:$0xff]  ;;  %v753_v46 = vld [vmem:[#allocation2 + $0x230] sm:$0xff] }
 0x3bb   :  { %v569_v49 = vmax.f32 %v567_v45, %v568_v47  ;;  %v561_v50 = vrot.slane %v560_v48, 1  ;;  %v754_v45 = vld [vmem:[#allocation2 + $0x238] sm:$0xff]  ;;  %v752_v47 = vld [vmem:[#allocation2 + $0x228] sm:$0xff] }
 0x3bd   :  { %v571_v51 = vsub.f32 %v1230_v32, %v569_v49  ;;  %v562_v52 = vmax.f32 %v560_v48, %v561_v50  ;;  %v763_v32 = vld [vmem:[#allocation2 + $0x280] sm:$0xff]  ;;  %v750_v49 = vld [vmem:[#allocation2 + $0x218] sm:$0xff]  ;;  %v749_v50 = vld [vmem:[#allocation2 + $0x210] sm:$0xff] }
 0x3be   :  { %v751_v48 = vld [vmem:[#allocation2 + $0x220] sm:$0xff] }
 0x3bf   :  { %v574_v53 = vmul.f32 1.442695, %v571_v51  ;;  %v570_v54 = vsub.f32 %v546_v39, %v562_v52  ;;  %v760_v39 = vld [vmem:[#allocation2 + $0x268] sm:$0xff]  ;;  %v747_v52 = vld [vmem:[#allocation2 + $0x200] sm:$0xff] }
 0x3c0   :  { %v748_v51 = vld [vmem:[#allocation2 + $0x208] sm:$0xff] }
 0x3c1   :  { %1246 = vpow2.f32 %v574_v53  ;;  %v572_v55 = vmul.f32 1.442695, %v570_v54  ;;  %v810_v53 = vld [vmem:[#allocation2 + $0x3f8] sm:$0xff]  ;;  %v809_v54 = vld [vmem:[#allocation2 + $0x3f0] sm:$0xff] }
 0x3c3   :  { %1248 = vpow2.f32 %v572_v55  ;;  %v808_v55 = vld [vmem:[#allocation2 + $0x3e8] sm:$0xff] }
 0x3ce   :  { %v1247_v56 = vpop.eup %1246 }
 0x3cf   :  { %v583_v57 = vsel %vm555_vm2, %v1247_v56, 0.0 }
 0x3d0   :  { %v1249_v58 = vpop.eup %1248  ;;  %v584_v59 = vrot.slane %v583_v57, 4 }
 0x3d1   :  { %v576_v60 = vsel %vm555_vm2, %v1249_v58, 0.0 }
 0x3d2   :  { %v577_v61 = vrot.slane %v576_v60, 4  ;;  %v585_v62 = vadd.f32 %v584_v59, %v583_v57  ;;  %v806_v57 = vld [vmem:[#allocation2 + $0x3d8] sm:$0xff]  ;;  %v804_v59 = vld [vmem:[#allocation2 + $0x3c8] sm:$0xff] }
 0x3d4   :  { %v578_v63 = vadd.f32 %v577_v61, %v576_v60  ;;  %v586_v1 = vrot.slane %v585_v62, 2  ;;  %v803_v60 = vld [vmem:[#allocation2 + $0x3c0] sm:$0xff]  ;;  %v802_v61 = vld [vmem:[#allocation2 + $0x3b8] sm:$0xff] }
 0x3d6   :  { %v579_v2 = vrot.slane %v578_v63, 2  ;;  %v587_v3 = vadd.f32 %v586_v1, %v585_v62  ;;  %v801_v62 = vld [vmem:[#allocation2 + $0x3b0] sm:$0xff]  ;;  %v799_v1 = vld [vmem:[#allocation2 + $0x3a0] sm:$0xff] }
 0x3d8   :  { %v580_v5 = vadd.f32 %v579_v2, %v578_v63  ;;  %v588_v6 = vrot.slane %v587_v3, 1  ;;  %v800_v63 = vld [vmem:[#allocation2 + $0x3a8] sm:$0xff]  ;;  %v798_v2 = vld [vmem:[#allocation2 + $0x398] sm:$0xff] }
 0x3da   :  { %v581_v8 = vrot.slane %v580_v5, 1  ;;  %v589_v9 = vadd.f32 %v588_v6, %v587_v3  ;;  %v797_v3 = vld [vmem:[#allocation2 + $0x390] sm:$0xff]  ;;  %v794_v6 = vld [vmem:[#allocation2 + $0x378] sm:$0xff] }
 0x3dc   :  { %v582_v11 = vadd.f32 %v581_v8, %v580_v5  ;;  %v591_v14 = vmul.f32 0.125001, %v589_v9  ;;  %v795_v5 = vld [vmem:[#allocation2 + $0x380] sm:$0xff]  ;;  %v793_v8 = vld [vmem:[#allocation2 + $0x370] sm:$0xff]  ;;  %v792_v9 = vld [vmem:[#allocation2 + $0x368] sm:$0xff] }
 0x3de   :  { %v590_v13 = vmul.f32 0.125001, %v582_v11  ;;  %vm593_vm4 = vcmp.gt.f32.partialorder %v1247_v56, %v591_v14  ;;  %v807_v56 = vld [vmem:[#allocation2 + $0x3e0] sm:$0xff]  ;;  %v789_v14 = vld [vmem:[#allocation2 + $0x350] sm:$0xff] }
 0x3df   :  { %v1127_v23 = vsel %vm593_vm4, 1.0, %v1299_v0  ;;  %v791_v11 = vld [vmem:[#allocation2 + $0x360] sm:$0xff] }
 0x3e0   :  { %vm592_vm3 = vcmp.gt.f32.partialorder %v1249_v58, %v590_v13  ;;  %v805_v58 = vld [vmem:[#allocation2 + $0x3d0] sm:$0xff]  ;;  %v84_v13 = vsub.s32 2, %v1461_v33 }
 0x3e1   :  { %v1126_v17 = vsel %vm592_vm3, 1.0, %v1299_v0 }
 0x3e2   :  { %1128 = vmatmul.mubr.msk.f32.vlgmr.msra.gmra.mxu0 %vm555_vm2, %v1126_v17  ;;  %v787_v17 = vld [vmem:[#allocation2 + $0x340] sm:$0xff] }
 0x3e3   :  { %901 = vmatpush1.msra.mxu0 %v777_v16  ;;  %676 = vmatprep.mubr.f32.mxu0 %v1299_v0  ;;  %v764_v0 = vld [vmem:[#allocation2 + $0x288] sm:$0xff]  ;;  %v255_v16 = vpop.f32.mrf.mxu1 }
 0x3e4   :  { %902 = vmatprep.subr.mxu0 %v776_v18  ;;  %v786_v18 = vld [vmem:[#allocation2 + $0x338] sm:$0xff] }
 0x3e5   :  { %903 = vmatpush1.msra.mxu0 %v775_v19  ;;  %v85_v19 = vrot.slane %v1467_v35, %v84_v13 }
 0x3e6   :  { %904 = vmatprep.subr.mxu0 %v774_v21  ;;  %1129 = vmatmul.mubr.msk.f32.gmra.mxu0 %vm555_vm2, %v1127_v23  ;;  %v784_v21 = vld [vmem:[#allocation2 + $0x328] sm:$0xff]  ;;  %v783_v23 = vld [vmem:[#allocation2 + $0x320] sm:$0xff] }
 0x3e7   :  { %905 = vmatpush1.msra.mxu0 %v773_v22  ;;  %964 = vmatprep.mubr.f32.mxu0 %v338_v20  ;;  %v785_v20 = vld [vmem:[#allocation2 + $0x330] sm:$0xff]  ;;  %v257_v22 = vpop.f32.mrf.mxu1 }
 0x3e8   :  { %906 = vmatprep.subr.mxu0 %v772_v24  ;;  %v258_v24 = vadd.f32 %v257_v22, %v1514_v10  ;;  %v1000_v10 = vld [vmem:[%s1649_s9 + $0x78] sm:$0xff] }
 0x3e9   :  { %907 = vmatpush1.msra.mxu0 %v771_v25  ;;  %v782_v25 = vld [vmem:[#allocation2 + $0x318] sm:$0xff] }
 0x3ea   :  { %908 = vmatprep.subr.mxu0 %v770_v26  ;;  %v250_v26 = vadd.f32 %v1511_v7, %v85_v19  ;;  %v343_v35 = vmax.f32 %v258_v24, 0.0  ;;  %v1016_v7 = vld [vmem:[%s1649_s9 + $0xf8] sm:$0xff] }
 0x3eb   :  { %909 = vmatpush1.msra.mxu0 %v769_v27  ;;  %v781_v27 = vld [vmem:[#allocation2 + $0x310] sm:$0xff]  ;;  %1152 = vmatprep.subr.mxu1 %v1016_v7  ;;  %v1250_v7 = vld [vmem:[%s1640_s0] sm:$0xff] }
 0x3ec   :  { %910 = vmatprep.subr.mxu0 %v768_v28  ;;  %v780_v28 = vld [vmem:[#allocation2 + $0x308] sm:$0xff]  ;;  %1153 = vmatpush3.msra.mxu1 %v1000_v10  ;;  %v1092_v10 = vmul.f32 9.0, %v1250_v7 }
 0x3ed   :  { %911 = vmatpush1.msra.mxu0 %v767_v29  ;;  %v779_v29 = vld [vmem:[#allocation2 + $0x300] sm:$0xff] }
 0x3ee   :  { %912 = vmatprep.subr.mxu0 %v766_v30  ;;  %v337_v30 = vmax.f32 %v250_v26, 0.0 }
 0x3ef   :  { %913 = vmatpush1.msra.mxu0 %v765_v31  ;;  %v256_v31 = vadd.f32 %v255_v16, %v85_v19 }
 0x3f0   :  { %914 = vmatprep.subr.mxu0 %v764_v0 }
 0x3f1   :  { %915 = vmatpush1.msra.mxu0 %v763_v32  ;;  %v342_v0 = vmax.f32 %v256_v31, 0.0  ;;  %v1015_v32 = vld [vmem:[%s1649_s9 + $0xf0] sm:$0xff] }
 0x3f2   :  { %916 = vmatprep.subr.mxu0 %v762_v37  ;;  %v999_v37 = vld [vmem:[%s1649_s9 + $0x70] sm:$0xff]  ;;  %1154 = vmatprep.subr.mxu1 %v1015_v32 }
 0x3f3   :  { %917 = vmatpush1.msra.mxu0 %v761_v38  ;;  %v1014_v38 = vld [vmem:[%s1649_s9 + $0xe8] sm:$0xff]  ;;  %1155 = vmatpush3.msra.mxu1 %v999_v37 }
 0x3f4   :  { %918 = vmatprep.subr.mxu0 %v760_v39  ;;  %v998_v39 = vld [vmem:[%s1649_s9 + $0x68] sm:$0xff]  ;;  %1156 = vmatprep.subr.mxu1 %v1014_v38 }
 0x3f5   :  { %919 = vmatpush1.msra.mxu0 %v759_v40  ;;  %v1013_v40 = vld [vmem:[%s1649_s9 + $0xe0] sm:$0xff]  ;;  %1157 = vmatpush3.msra.mxu1 %v998_v39 }
 0x3f6   :  { %920 = vmatprep.subr.mxu0 %v758_v41  ;;  %v997_v41 = vld [vmem:[%s1649_s9 + $0x60] sm:$0xff]  ;;  %1158 = vmatprep.subr.mxu1 %v1013_v40  ;;  %v1251_v40 = vld [vmem:[%s1640_s0 + $0x8] sm:$0xff] }
 0x3f7   :  { %921 = vmatpush1.msra.mxu0 %v757_v42  ;;  %v1012_v42 = vld [vmem:[%s1649_s9 + $0xd8] sm:$0xff]  ;;  %1159 = vmatpush3.msra.mxu1 %v997_v41  ;;  %v1093_v41 = vmul.f32 9.0, %v1251_v40 }
 0x3f8   :  { %922 = vmatprep.subr.mxu0 %v756_v43  ;;  %v996_v43 = vld [vmem:[%s1649_s9 + $0x58] sm:$0xff]  ;;  %1160 = vmatprep.subr.mxu1 %v1012_v42 }
 0x3f9   :  { %923 = vmatpush1.msra.mxu0 %v755_v44  ;;  %v1011_v44 = vld [vmem:[%s1649_s9 + $0xd0] sm:$0xff]  ;;  %1161 = vmatpush3.msra.mxu1 %v996_v43 }
 0x3fa   :  { %924 = vmatprep.subr.mxu0 %v754_v45  ;;  %v995_v45 = vld [vmem:[%s1649_s9 + $0x50] sm:$0xff]  ;;  %1162 = vmatprep.subr.mxu1 %v1011_v44 }
 0x3fb   :  { %925 = vmatpush1.msra.mxu0 %v753_v46  ;;  %v1010_v46 = vld [vmem:[%s1649_s9 + $0xc8] sm:$0xff]  ;;  %1163 = vmatpush3.msra.mxu1 %v995_v45 }
 0x3fc   :  { %926 = vmatprep.subr.mxu0 %v752_v47  ;;  %v994_v47 = vld [vmem:[%s1649_s9 + $0x48] sm:$0xff]  ;;  %1164 = vmatprep.subr.mxu1 %v1010_v46 }
 0x3fd   :  { %927 = vmatpush1.msra.mxu0 %v751_v48  ;;  %v1009_v48 = vld [vmem:[%s1649_s9 + $0xc0] sm:$0xff]  ;;  %1165 = vmatpush3.msra.mxu1 %v994_v47 }
 0x3fe   :  { %928 = vmatprep.subr.mxu0 %v750_v49  ;;  %v993_v49 = vld [vmem:[%s1649_s9 + $0x40] sm:$0xff]  ;;  %1166 = vmatprep.subr.mxu1 %v1009_v48 }
 0x3ff   :  { %929 = vmatpush1.msra.mxu0 %v749_v50  ;;  %v1008_v50 = vld [vmem:[%s1649_s9 + $0xb8] sm:$0xff]  ;;  %1167 = vmatpush3.msra.mxu1 %v993_v49 }
 0x400   :  { %930 = vmatprep.subr.mxu0 %v748_v51  ;;  %v992_v51 = vld [vmem:[%s1649_s9 + $0x38] sm:$0xff]  ;;  %1168 = vmatprep.subr.mxu1 %v1008_v50 }
 0x401   :  { %931 = vmatpush1.msra.mxu0 %v747_v52  ;;  %v1007_v52 = vld [vmem:[%s1649_s9 + $0xb0] sm:$0xff]  ;;  %1169 = vmatpush3.msra.mxu1 %v992_v51 }
 0x402   :  { %932 = vmatprep.subr.mxu0 %v810_v53  ;;  %v991_v53 = vld [vmem:[%s1649_s9 + $0x30] sm:$0xff]  ;;  %1170 = vmatprep.subr.mxu1 %v1007_v52 }
 0x403   :  { %933 = vmatpush2.msra.mxu0 %v809_v54  ;;  %v1006_v54 = vld [vmem:[%s1649_s9 + $0xa8] sm:$0xff]  ;;  %1171 = vmatpush3.msra.mxu1 %v991_v53 }
 0x404   :  { %934 = vmatprep.subr.mxu0 %v808_v55  ;;  %v990_v55 = vld [vmem:[%s1649_s9 + $0x28] sm:$0xff]  ;;  %1172 = vmatprep.subr.mxu1 %v1006_v54 }
 0x405   :  { %935 = vmatpush2.msra.mxu0 %v807_v56  ;;  %1173 = vmatpush3.msra.mxu1 %v990_v55  ;;  %v1005_v56 = vld [vmem:[%s1649_s9 + $0xa0] sm:$0xff] }
 0x406   :  { %936 = vmatprep.subr.mxu0 %v806_v57  ;;  %1174 = vmatprep.subr.mxu1 %v1005_v56  ;;  %v989_v57 = vld [vmem:[%s1649_s9 + $0x20] sm:$0xff] }
 0x407   :  { %937 = vmatpush2.msra.mxu0 %v805_v58  ;;  %1175 = vmatpush3.msra.mxu1 %v989_v57  ;;  %v1004_v58 = vld [vmem:[%s1649_s9 + $0x98] sm:$0xff] }
 0x408   :  { %938 = vmatprep.subr.mxu0 %v804_v59  ;;  %1176 = vmatprep.subr.mxu1 %v1004_v58  ;;  %v988_v59 = vld [vmem:[%s1649_s9 + $0x18] sm:$0xff] }
 0x409   :  { %939 = vmatpush2.msra.mxu0 %v803_v60  ;;  %1177 = vmatpush3.msra.mxu1 %v988_v59  ;;  %v1003_v60 = vld [vmem:[%s1649_s9 + $0x90] sm:$0xff] }
 0x40a   :  { %940 = vmatprep.subr.mxu0 %v802_v61  ;;  %1178 = vmatprep.subr.mxu1 %v1003_v60  ;;  %v987_v61 = vld [vmem:[%s1649_s9 + $0x10] sm:$0xff] }
 0x40b   :  { %941 = vmatpush2.msra.mxu0 %v801_v62  ;;  %1179 = vmatpush3.msra.mxu1 %v987_v61  ;;  %v1002_v62 = vld [vmem:[%s1649_s9 + $0x88] sm:$0xff] }
 0x40c   :  { %942 = vmatprep.subr.mxu0 %v800_v63  ;;  %1180 = vmatprep.subr.mxu1 %v1002_v62  ;;  %v986_v63 = vld [vmem:[%s1649_s9 + $0x8] sm:$0xff] }
 0x40d   :  { %943 = vmatpush2.msra.mxu0 %v799_v1  ;;  %1181 = vmatpush3.msra.mxu1 %v986_v63  ;;  %v1001_v1 = vld [vmem:[%s1649_s9 + $0x80] sm:$0xff] }
 0x40e   :  { %944 = vmatprep.subr.mxu0 %v798_v2  ;;  %1182 = vmatprep.subr.mxu1 %v1001_v1  ;;  %v985_v2 = vld [vmem:[%s1649_s9] sm:$0xff] }
 0x40f   :  { %945 = vmatpush2.msra.mxu0 %v797_v3  ;;  %1183 = vmatpush3.msra.mxu1 %v985_v2 }
 0x410   :  { %946 = vmatprep.subr.mxu0 %v796_v4  ;;  %v889_v4 = vpop.f32.mrf.mxu1 }
 0x411   :  { %947 = vmatpush2.msra.mxu0 %v795_v5 }
 0x412   :  { %948 = vmatprep.subr.mxu0 %v794_v6  ;;  %v811_v6 = vld [vmem:[%s1647_s7] sm:$0x3] }
 0x413   :  { %949 = vmatpush2.msra.mxu0 %v793_v8  ;;  %v891_v8 = vpop.f32.mrf.mxu1 }
 0x414   :  { %950 = vmatprep.subr.mxu0 %v792_v9 }
 0x415   :  { %951 = vmatpush2.msra.mxu0 %v791_v11  ;;  %v816_v11 = vrot.slane %v811_v6, %v76_v34  ;;  %v895_v13 = vpop.f32.mrf.mxu1 }
 0x416   :  { %952 = vmatprep.subr.mxu0 %v790_v12  ;;  %v820_v12 = vrot.slane %v811_v6, %v80_v36 }
 0x417   :  { %953 = vmatpush2.msra.mxu0 %v789_v14  ;;  %v897_v19 = vpop.f32.mrf.mxu1 }
 0x418   :  { %954 = vmatprep.subr.mxu0 %v788_v15  ;;  %v890_v15 = vadd.f32 %v889_v4, %v816_v11 }
 0x419   :  { %955 = vmatpush2.msra.mxu0 %v787_v17  ;;  %v892_v17 = vadd.f32 %v891_v8, %v820_v12 }
 0x41a   :  { %956 = vmatprep.subr.mxu0 %v786_v18 }
 0x41b   :  { %957 = vmatpush2.msra.mxu0 %v785_v20 }
 0x41c   :  { %958 = vmatprep.subr.mxu0 %v784_v21  ;;  %v896_v21 = vadd.f32 %v895_v13, %v816_v11 }
 0x41d   :  { %959 = vmatpush2.msra.mxu0 %v783_v23 }
 0x41e   :  { %960 = vmatprep.subr.mxu0 %v782_v25  ;;  %v898_v25 = vadd.f32 %v897_v19, %v820_v12 }
 0x41f   :  { %961 = vmatpush2.msra.mxu0 %v781_v27 }
 0x420   :  { %962 = vmatprep.subr.mxu0 %v780_v28 }
 0x421   :  { %963 = vmatpush2.msra.mxu0 %v779_v29 }
 0x422   :  { %965 = vmatmul.mubr.f32.vlgmr.msra.gmra.mxu0 %v337_v30 }
 0x423   :  { %970 = vmatprep.mubr.f32.mxu0 %v343_v35 }
 0x426   :  { %971 = vmatmul.mubr.f32.gmra.mxu0 %v342_v0 }
 0x4a2   :  { %v672_v3 = vpop.f32.mrf.mxu0 }
 0x4a4   :  { %v674_v5 = vpop.f32.mrf.mxu0 }
 0x4a6   :  { %v678_v9 = vpop.f32.mrf.mxu0 }
 0x4a8   :  { %v680_v14 = vpop.f32.mrf.mxu0 }
 0x4e2   :  { %v966_v16 = vpop.f32.mrf.mxu0 }
 0x4e3   :  { %v967_v18 = vadd.f32 %v966_v16, %v890_v15 }
 0x4e4   :  { %v968_v20 = vpop.f32.mrf.mxu0 }
 0x4e5   :  { %v969_v22 = vadd.f32 %v968_v20, %v892_v17  ;;  %v977_v23 = vmax.f32 %v967_v18, 0.0 }
 0x4e6   :  { %v972_v24 = vpop.f32.mrf.mxu0 }
 0x4e7   :  { %v978_v26 = vmax.f32 %v969_v22, 0.0  ;;  %v973_v27 = vadd.f32 %v972_v24, %v896_v21  ;;  %v981_v33 = vmul.f32 %v977_v23, %v672_v3 }
 0x4e8   :  { %v974_v28 = vpop.f32.mrf.mxu0 }
 0x4e9   :  { %v982_v34 = vmul.f32 %v978_v26, %v674_v5  ;;  %v975_v29 = vadd.f32 %v974_v28, %v898_v25  ;;  %v979_v36 = vmax.f32 %v973_v27, 0.0 }
 0x4eb   :  { %v980_v35 = vmax.f32 %v975_v29, 0.0  ;;  %1081 = vmatprep.mubr.f32.mxu1 %v982_v34  ;;  %v983_v31 = vmul.f32 %v979_v36, %v678_v9 }
 0x4ec   :  { %1082 = vmatmul.mubr.f32.vlgmr.msra.gmra.mxu1 %v981_v33 }
 0x4ed   :  { %v984_v30 = vmul.f32 %v980_v35, %v680_v14 }
 0x4ef   :  { %1086 = vmatprep.mubr.f32.mxu1 %v984_v30 }
 0x4f0   :  { %1087 = vmatmul.mubr.f32.gmra.mxu1 %v983_v31 }
 0x5ac   :  { %v1184_v0 = vpop.f32.mrf.mxu1 }
 0x5ae   :  { %v1185_v32 = vpop.f32.mrf.mxu1 }
 0x5af   :  { %v1186_v37 = vadd.f32 %v1185_v32, %v1184_v0 }
 0x5b0   :  { %v1187_v38 = vpop.f32.mrf.mxu1 }
 0x5b1   :  { %v1094_v39 = vadd.f32 %v1186_v37, %v1092_v10 }
 0x5b2   :  { %v1188_v42 = vpop.f32.mrf.mxu1 }
 0x5b3   :  { %1096 = vst.msk [vmem:[#allocation5] sm:$0xff] %vm99_vm0, %v1094_v39  ;;  %v1189_v43 = vadd.f32 %v1188_v42, %v1187_v38 }
 0x5b5   :  { %v1095_v44 = vadd.f32 %v1189_v43, %v1093_v41 }
 0x5b7   :  { %1097 = vst.msk [vmem:[#allocation5 + $0x8] sm:$0xff] %vm99_vm0, %v1095_v44 }
 0x5b8   :  { %1283 = shalt.err (!%p1280_p9)
}
 0x5b9   :  { %s1301_s19 = smov 128   ;;  %s1302_s0 = smov 8  }
 0x5ba   :  { %1109 = dma.vmem_to_hbm [thread:$0]  %s1104_s4, 256, %s1650_s10, [#allocation4], %s1301_s19, %s1301_s19, %s1302_s0  }
 0x5bb   :  { %1294 = dma.done.wait [#allocation4], 256  }
 0x5bc   :  { %1295 = vsyncadd [#allocation4], 4294967040 }
 0x5bd   :  { %1113 = vsyncpa [#allocation3], 1 }
 0x5be   :  { %1114 = vsyncpa [#allocation4], 1 }

</bundles_post_ra>
